<compile_context>
chip_gen: v5e
topology: v5e:2x2
jax: 0.10.0
libtpu: 0.0.40
codegen_flags: <defaults>
</compile_context>

<pallas_src>
import math
import numpy as np
import jax
import jax.numpy as jnp
from jax.experimental import pallas as pl
from jax.experimental.pallas import tpu as pltpu

# ----- small shapes consistent with the module -----
T_EMBEDDING = 32          # t_embedding (even, as the module assumes)
BATCH = 16                # x.shape[0] (the only x dim the forward actually uses)
SEQ = 8                   # trailing x dims (unused by the math)
MAX_TB = 512              # batch rows per grid step for large batches


# ---------------------------------------------------------------- kernel ----
def pos_enc_kernel(t_ref, freq_ref, phase_ref, o_ref):
    # t_ref: (TB, 1) per-row time; freq_ref/phase_ref: (1, E) interleaved constants.
    #   t_emb[:, 2k]   = sin(t * div[k])
    #   t_emb[:, 2k+1] = cos(t * div[k]) = sin(t * div[k] + pi/2)
    ang = t_ref[...] * freq_ref[...] + phase_ref[...]     # (TB, E)  VPU mul + add
    o_ref[...] = jnp.sin(ang)                             # single EUP transcendental / elem


# -------------------------------------------------------------- wrapper -----
def positional_encoding_forward(t, x, div_term):
    """t: scalar / () / (1,) / (B,1);  x: (B, ...);  div_term: (E//2,)  ->  (B, E)."""
    B = x.shape[0]
    E = 2 * div_term.shape[0]

    t = jnp.asarray(t, jnp.float32)
    if t.size == 1:
        # same t over the entire batch
        t_col = jnp.broadcast_to(t.reshape(()), (B, 1)).astype(jnp.float32)
    elif t.shape == (B, 1):
        t_col = t.astype(jnp.float32)
    else:
        raise ValueError(f"t has wrong shape {t.shape}")

    div = div_term.astype(jnp.float32)
    # Host-side prep of lane-dense constant rows:
    #   freq[2k] = freq[2k+1] = div[k]
    #   phase[2k] = 0, phase[2k+1] = pi/2   (cos via phase-shifted sin)
    freq = jnp.repeat(div, 2).reshape(1, E)
    phase = jnp.tile(jnp.asarray([0.0, 0.5 * math.pi], jnp.float32), E // 2).reshape(1, E)

    # Batch tiling: single grid step for small batches, 512-row parallel tiles otherwise.
    if B <= MAX_TB:
        tb = ((B + 7) // 8) * 8
        b_pad = tb
    else:
        tb = MAX_TB
        b_pad = ((B + tb - 1) // tb) * tb
    if b_pad != B:
        t_col = jnp.pad(t_col, ((0, b_pad - B), (0, 0)))

    out = pl.pallas_call(
        pos_enc_kernel,
        out_shape=jax.ShapeDtypeStruct((b_pad, E), jnp.float32),
        grid_spec=pltpu.PrefetchScalarGridSpec(
            num_scalar_prefetch=0,
            grid=(b_pad // tb,),
            in_specs=[
                pl.BlockSpec((tb, 1), lambda i: (i, 0)),   # per-row t
                pl.BlockSpec((1, E), lambda i: (0, 0)),    # resident frequency row
                pl.BlockSpec((1, E), lambda i: (0, 0)),    # resident phase row
            ],
            out_specs=pl.BlockSpec((tb, E), lambda i: (i, 0)),
        ),
        compiler_params=pltpu.CompilerParams(dimension_semantics=("parallel",)),
    )(t_col, freq, phase)

    return out[:B]


# -------------------------------------------------------- numpy reference ---
def reference_forward(t, B, E):
    div = np.exp(np.arange(0, E, 2) * (-math.log(10000.0) / E)).astype(np.float64)
    t = np.asarray(t, np.float64)
    if t.size == 1:
        t_full = np.full((B, E), float(t.reshape(())), np.float64)
    else:
        t_full = np.repeat(t.reshape(B, 1), E, axis=1)
    emb = np.zeros((B, E), np.float64)
    emb[:, 0::2] = np.sin(t_full[:, 0::2] * div)
    emb[:, 1::2] = np.cos(t_full[:, 1::2] * div)
    return emb.astype(np.float32)


# ------------------------------------------------------------------ main ----
if __name__ == "__main__":
    key = jax.random.PRNGKey(0)
    kx, kt = jax.random.split(key)

    x = jax.random.normal(kx, (BATCH, SEQ, T_EMBEDDING), jnp.float32)
    t_batch = jax.random.uniform(kt, (BATCH, 1), jnp.float32, 0.0, 1.0)  # t in [0, sde_T]
    t_scalar = jnp.float32(0.37)

    div_term = jnp.asarray(
        np.exp(np.arange(0, T_EMBEDDING, 2) * (-math.log(10000.0) / T_EMBEDDING)),
        jnp.float32)

    fwd = jax.jit(lambda tt, xx: positional_encoding_forward(tt, xx, div_term))

    # per-row t of shape (B, 1)
    out_b = jax.block_until_ready(fwd(t_batch, x))
    assert out_b.shape == (BATCH, T_EMBEDDING), out_b.shape
    ref_b = reference_forward(np.asarray(t_batch), BATCH, T_EMBEDDING)
    np.testing.assert_allclose(np.asarray(out_b), ref_b, rtol=1e-4, atol=1e-4)

    # scalar t (same t over entire batch)
    out_s = jax.block_until_ready(fwd(t_scalar, x))
    assert out_s.shape == (BATCH, T_EMBEDDING), out_s.shape
    ref_s = reference_forward(np.asarray(t_scalar), BATCH, T_EMBEDDING)
    np.testing.assert_allclose(np.asarray(out_s), ref_s, rtol=1e-4, atol=1e-4)

    print("KERNEL_OK")
</pallas_src>

<mosaic_0001>
module attributes {stable_mosaic.version = 11 : i64} {
  func.func @pos_enc_kernel(%arg0: i32, %arg1: memref<16x1xf32, #tpu.memory_space<vmem>>, %arg2: memref<1x32xf32, #tpu.memory_space<vmem>>, %arg3: memref<1x32xf32, #tpu.memory_space<vmem>>, %arg4: memref<16x32xf32, #tpu.memory_space<vmem>>) attributes {dimension_semantics = [#tpu.dimension_semantics<parallel>], iteration_bounds = array<i64: 1>, scalar_prefetch = 0 : i64, scratch_operands = 0 : i64, tpu.core_type = #tpu.core_type<tc>, window_params = [{transform_indices = @transform_0, window_bounds = array<i64: 16, 1>}, {pipeline_mode = #tpu.pipeline_mode<synchronous>, transform_indices = @transform_1, window_bounds = array<i64: 1, 32>}, {pipeline_mode = #tpu.pipeline_mode<synchronous>, transform_indices = @transform_2, window_bounds = array<i64: 1, 32>}, {transform_indices = @transform_3, window_bounds = array<i64: 16, 32>}]} {
    %c0 = arith.constant 0 : index
    %c0_0 = arith.constant 0 : index
    %0 = vector.load %arg1[%c0, %c0_0] : memref<16x1xf32, #tpu.memory_space<vmem>>, vector<16x1xf32>
    %c0_1 = arith.constant 0 : index
    %c0_2 = arith.constant 0 : index
    %1 = vector.load %arg2[%c0_1, %c0_2] : memref<1x32xf32, #tpu.memory_space<vmem>>, vector<1x32xf32>
    %2 = vector.broadcast %0 : vector<16x1xf32> to vector<16x32xf32>
    %3 = vector.broadcast %1 : vector<1x32xf32> to vector<16x32xf32>
    %4 = arith.mulf %2, %3 : vector<16x32xf32>
    %c0_3 = arith.constant 0 : index
    %c0_4 = arith.constant 0 : index
    %5 = vector.load %arg3[%c0_3, %c0_4] : memref<1x32xf32, #tpu.memory_space<vmem>>, vector<1x32xf32>
    %6 = vector.broadcast %5 : vector<1x32xf32> to vector<16x32xf32>
    %7 = arith.addf %4, %6 : vector<16x32xf32>
    %8 = math.sin %7 : vector<16x32xf32>
    %c0_5 = arith.constant 0 : index
    %c0_6 = arith.constant 0 : index
    %9 = vector.load %arg4[%c0_5, %c0_6] : memref<16x32xf32, #tpu.memory_space<vmem>>, vector<16x32xf32>
    tpu.vector_store %arg4[%c0_5, %c0_6], %8 {strides = array<i32>} : memref<16x32xf32, #tpu.memory_space<vmem>>, vector<16x32xf32>,
    return
  }
  func.func @transform_0(%arg0: i32) -> (i32, i32) {
    %c0_i32 = arith.constant 0 : i32
    %c0_i32_0 = arith.constant 0 : i32
    return %arg0, %c0_i32 : i32, i32
  }
  func.func @transform_1(%arg0: i32) -> (i32, i32) {
    %c0_i32 = arith.constant 0 : i32
    %c0_i32_0 = arith.constant 0 : i32
    %c0_i32_1 = arith.constant 0 : i32
    return %c0_i32, %c0_i32_0 : i32, i32
  }
  func.func @transform_2(%arg0: i32) -> (i32, i32) {
    %c0_i32 = arith.constant 0 : i32
    %c0_i32_0 = arith.constant 0 : i32
    %c0_i32_1 = arith.constant 0 : i32
    return %c0_i32, %c0_i32_0 : i32, i32
  }
  func.func @transform_3(%arg0: i32) -> (i32, i32) {
    %c0_i32 = arith.constant 0 : i32
    %c0_i32_0 = arith.constant 0 : i32
    return %arg0, %c0_i32 : i32, i32
  }
}

</mosaic_0001>

<bundles_post_ra>
// kernel: tile.6
= control target key start
LH: loop header
LB: loop body
LE: loop exit
PB: predicated region body
PF: predicated region fallthrough
CT: control target
= control target key end

     0   :  { %s28_s0 = inlined_call_operand.vmem [shape: f32[2], index: 0, kind: input, shape index: {}]   ;;  %s29_s1 = inlined_call_operand.vmem [shape: f32[16,2], index: 1, kind: output, shape index: {}]  }
   0x1   :  { %v4_v0 = vld [vmem:[%s28_s0] ss:$0 sm:$0xff] }
   0x2   :  { %5 = vst [vmem:[%s29_s1] sm:$0xff] %v4_v0 }
   0x3   :  { %8 = vst [vmem:[%s29_s1 + $0x8] sm:$0xff] %v4_v0 }

// kernel: _lambda_.1
= control target key start
LH: loop header
LB: loop body
LE: loop exit
PB: predicated region body
PF: predicated region fallthrough
CT: control target
= control target key end

     0   :  { %v415_v1 = vmov 0   ;;  %s604_s0 = inlined_call_operand.vmem [shape: f32[16,1], index: 0, kind: input, shape index: {}]   ;;  %s605_s1 = inlined_call_operand.vmem [shape: f32[1,32], index: 1, kind: input, shape index: {}]   ;;  %s606_s2 = inlined_call_operand.vmem [shape: f32[1,32], index: 2, kind: input, shape index: {}]   ;;  %s607_s3 = inlined_call_operand.hbm [shape: f32[16,32], index: 3, kind: output, shape index: {}]  }
   0x1   :  { %v15_v0 = vld [vmem:[%s604_s0] sm:$0xff]  ;;  %386 = vset.pattern.permute.xlu0 %v415_v1 }
   0x2   :  { %20 = vperm.xlu0 %386, %v15_v0  }
   0x3   :  { %8 = vsyncpa [#allocation3], 0  ;;  %v16_v2 = vld [vmem:[%s604_s0 + $0x8] sm:$0xff]  ;;  %v387_v3 = vld [vmem:[%s605_s1] ss:$0 sm:$0xff]  ;;  %s422_s0 = smov [#allocation2]  }
   0x4   :  { %v388_v4 = vld [vmem:[%s606_s2] ss:$0 sm:$0xff]  ;;  %v416_v28 = vmov 683565275   ;;  %v417_v30 = vmov 2475754826  }
   0x5   :  { %v418_v34 = vmov 2131351028   ;;  %v419_v37 = vmov 2102212464   ;;  %v420_v40 = vmov 920167782  }
   0x6   :  { %v421_v43 = vmov 1326507024   ;;  %s356_s1 = sshll.u32 %s422_s0, 4  ;;  %s358_s21 = sshll.u32 %s607_s3, 4  ;;  %s357_s1 = int_to_ptr.vmem [resolvable:$true] %s356_s1  ;;  %s359_s21 = int_to_ptr.hbm [resolvable:$true] %s358_s21 }
   0x7   :  { %s423_s22 = smov 128   ;;  %s424_s23 = smov 8  }
   0xa   :  { %25 = vperm.xlu0 %386, %v16_v2  }
  0x74   :  { %v21_v5 = vpop.permute.xlu0 %20 }
  0x75   :  { %v31_v6 = vmul.f32 %v387_v3, %v21_v5 }
  0x77   :  { %v458_v7 = vadd.f32 %v388_v4, %v31_v6 }
  0x79   :  { %v39_v8 = vand.u32 2147483647, %v458_v7  ;;  %v42_v9 = vand.u32 2139095040, %v458_v7 }
  0x7b   :  { %v43_v10 = vshrl.u32 %v42_v9, 23  ;;  %v46_v11 = vand.u32 8388607, %v39_v8 }
  0x7c   :  { %v26_v12 = vpop.permute.xlu0 %25 }
  0x7d   :  { %v370_v13 = vadd.s32 4294967169, %v43_v10  ;;  %v47_v14 = vor.u32 8388608, %v46_v11  ;;  %v32_v15 = vmul.f32 %v387_v3, %v26_v12 }
  0x7f   :  { %v49_v16 = vadd.s32 1, %v370_v13  ;;  %v464_v17 = vadd.f32 %v388_v4, %v32_v15  ;;  %v466_v18 = vshll.u32 %v47_v14, 8 }
  0x81   :  { %vm50_vm0 = vcmp.gt.s32.totalorder %v49_v16, 0  ;;  %v194_v20 = vand.u32 2147483647, %v464_v17  ;;  %v197_v21 = vand.u32 2139095040, %v464_v17  ;;  %v88_v24 = vand.u32 65535, %v466_v18 }
  0x82   :  { %v51_v19 = vsel %vm50_vm0, %v49_v16, 0  ;;  %v89_v25 = vshrl.u32 %v466_v18, 16 }
  0x83   :  { %v53_v22 = vand.u32 31, %v51_v19  ;;  %v198_v26 = vshrl.u32 %v197_v21, 23  ;;  %v52_v27 = vshrl.u32 %v51_v19, 5  ;;  %v476_v32 = vand.u32 8388607, %v194_v20 }
  0x85   :  { %v54_v23 = vsub.s32 32, %v53_v22  ;;  %v56_v29 = vshll.u32 %v416_v28, %v53_v22  ;;  %v59_v31 = vshll.u32 %v417_v30, %v53_v22  ;;  %v62_v36 = vshll.u32 %v418_v34, %v53_v22 }
  0x86   :  { %v65_v39 = vshll.u32 %v419_v37, %v53_v22  ;;  %v68_v42 = vshll.u32 %v420_v40, %v53_v22  ;;  %v373_v48 = vadd.s32 4294967169, %v198_v26  ;;  %vm71_vm1 = vcmp.lt.s32.totalorder %v52_v27, 1 }
  0x87   :  { %v57_v33 = vshrl.u32 %v417_v30, %v54_v23  ;;  %v60_v35 = vshrl.u32 %v418_v34, %v54_v23  ;;  %v63_v38 = vshrl.u32 %v419_v37, %v54_v23  ;;  %v66_v41 = vshrl.u32 %v420_v40, %v54_v23 }
  0x88   :  { %v69_v44 = vshrl.u32 %v421_v43, %v54_v23  ;;  %vm74_vm2 = vcmp.lt.s32.totalorder %v52_v27, 4  ;;  %v55_v51 = vshrl.u32 %v416_v28, %v54_v23  ;;  %vm73_vm3 = vcmp.lt.s32.totalorder %v52_v27, 3 }
  0x89   :  { %v58_v45 = vor.u32 %v57_v33, %v56_v29  ;;  %v61_v46 = vor.u32 %v60_v35, %v59_v31  ;;  %v64_v47 = vor.u32 %v63_v38, %v62_v36  ;;  %v67_v49 = vor.u32 %v66_v41, %v65_v39 }
  0x8a   :  { %v70_v50 = vor.u32 %v69_v44, %v68_v42  ;;  %v204_v57 = vadd.s32 1, %v373_v48  ;;  %vm72_vm4 = vcmp.lt.s32.totalorder %v52_v27, 2  ;;  %v202_v5 = vor.u32 8388608, %v476_v32 }
  0x8b   :  { %v76_v52 = vsel %vm74_vm2, %v64_v47, 2102212464  ;;  %v79_v53 = vsel %vm71_vm1, %v58_v45, %v61_v46  ;;  %v83_v54 = vsel %vm71_vm1, %v61_v46, %v64_v47  ;;  %v80_v55 = vsel %vm74_vm2, %v67_v49, 920167782 }
  0x8c   :  { %v84_v56 = vsel %vm74_vm2, %v70_v50, 1326507024  ;;  %v75_v58 = vsel %vm71_vm1, %v55_v51, %v58_v45  ;;  %v81_v59 = vsel %vm73_vm3, %v64_v47, %v80_v55  ;;  %v77_v61 = vsel %vm73_vm3, %v61_v46, %v76_v52 }
  0x8d   :  { %v85_v60 = vsel %vm73_vm3, %v67_v49, %v84_v56  ;;  %v82_v62 = vsel %vm72_vm4, %v79_v53, %v81_v59  ;;  %vm205_vm5 = vcmp.gt.s32.totalorder %v204_v57, 0  ;;  %v488_v6 = vsel %vm72_vm4, %v75_v58, %v77_v61 }
  0x8e   :  { %v86_v63 = vsel %vm72_vm4, %v83_v54, %v85_v60  ;;  %v112_v3 = vand.u32 65535, %v82_v62  ;;  %v113_v4 = vshrl.u32 %v82_v62, 16  ;;  %v206_v11 = vsel %vm205_vm5, %v204_v57, 0 }
  0x8f   :  { %v90_v0 = vand.u32 65535, %v86_v63  ;;  %v91_v2 = vshrl.u32 %v86_v63, 16  ;;  %v208_v33 = vand.u32 31, %v206_v11  ;;  %v495_v44 = vshrl.u32 %v206_v11, 5 }
  0x90   :  { %v115_v14 = vmul.u32 %v113_v4, %v88_v24  ;;  %v116_v15 = vmul.u32 %v112_v3, %v89_v25  ;;  %v114_v21 = vmul.u32 %v112_v3, %v88_v24  ;;  %v117_v22 = vmul.u32 %v113_v4, %v89_v25 }
  0x91   :  { %v93_v9 = vmul.u32 %v91_v2, %v88_v24  ;;  %v94_v10 = vmul.u32 %v90_v0, %v89_v25  ;;  %v92_v12 = vmul.u32 %v90_v0, %v88_v24  ;;  %v95_v13 = vmul.u32 %v91_v2, %v89_v25 }
  0x92   :  { %v118_v27 = vshll.u32 %v115_v14, 16  ;;  %v119_v29 = vshrl.u32 %v115_v14, 16  ;;  %v120_v32 = vshll.u32 %v116_v15, 16  ;;  %v121_v36 = vshrl.u32 %v116_v15, 16 }
  0x93   :  { %v96_v16 = vshll.u32 %v93_v9, 16  ;;  %v97_v19 = vshrl.u32 %v93_v9, 16  ;;  %v98_v23 = vshll.u32 %v94_v10, 16  ;;  %v99_v26 = vshrl.u32 %v94_v10, 16 }
  0x94   :  { %vm122_vm7 = vc.u32 %v114_v21, %v118_v27  ;;  %v124_v38 = vadd.s32 %v118_v27, %v114_v21  ;;  %v492_v42 = vsub.s32 32, %v208_v33  ;;  %v211_v48 = vshll.u32 %v416_v28, %v208_v33 }
  0x95   :  { %vm100_vm6 = vc.u32 %v92_v12, %v96_v16  ;;  %v102_v31 = vadd.s32 %v96_v16, %v92_v12  ;;  %v123_v41 = vsel %vm122_vm7, 1, %v415_v1  ;;  %v214_v51 = vshll.u32 %v417_v30, %v208_v33 }
  0x96   :  { %v101_v35 = vsel %vm100_vm6, 1, %v415_v1  ;;  %v125_v25 = vadd.s32 %v123_v41, %v117_v22  ;;  %vm126_vm9 = vc.u32 %v124_v38, %v120_v32  ;;  %v498_v47 = vadd.s32 %v124_v38, %v120_v32 }
  0x97   :  { %v103_v39 = vadd.s32 %v101_v35, %v95_v13  ;;  %vm104_vm8 = vc.u32 %v102_v31, %v98_v23  ;;  %v127_v46 = vsel %vm126_vm9, 1, %v415_v1  ;;  %v212_v50 = vshrl.u32 %v417_v30, %v492_v42 }
  0x98   :  { %v105_v24 = vsel %vm104_vm8, 1, %v415_v1  ;;  %v129_v49 = vadd.s32 %v127_v46, %v125_v25  ;;  %v215_v52 = vshrl.u32 %v418_v34, %v492_v42  ;;  %v217_v54 = vshll.u32 %v418_v34, %v208_v33 }
  0x99   :  { %v107_v45 = vadd.s32 %v105_v24, %v103_v39  ;;  %v218_v55 = vshrl.u32 %v419_v37, %v492_v42  ;;  %v220_v56 = vshll.u32 %v419_v37, %v208_v33  ;;  %v510_v58 = vor.u32 %v212_v50, %v211_v48 }
  0x9a   :  { %v130_v57 = vadd.s32 %v129_v49, %v119_v29  ;;  %v512_v59 = vor.u32 %v215_v52, %v214_v51  ;;  %v221_v60 = vshrl.u32 %v420_v40, %v492_v42  ;;  %v223_v62 = vshll.u32 %v420_v40, %v208_v33 }
  0x9b   :  { %v108_v53 = vadd.s32 %v107_v45, %v97_v19  ;;  %v219_v61 = vor.u32 %v218_v55, %v217_v54  ;;  %v224_v34 = vshrl.u32 %v421_v43, %v492_v42  ;;  %vm226_vm11 = vcmp.lt.s32.totalorder %v495_v44, 1 }
  0x9c   :  { %v131_v63 = vadd.s32 %v130_v57, %v121_v36  ;;  %v222_v0 = vor.u32 %v221_v60, %v220_v56  ;;  %v524_v2 = vshll.u32 %v202_v5, 8  ;;  %v132_v3 = vmul.u32 %v466_v18, %v488_v6 }
  0x9d   :  { %v516_v30 = vadd.s32 %v108_v53, %v99_v26  ;;  %v225_v37 = vor.u32 %v224_v34, %v223_v62  ;;  %vm229_vm12 = vcmp.lt.s32.totalorder %v495_v44, 4  ;;  %v234_v40 = vsel %vm226_vm11, %v510_v58, %v512_v59 }
  0x9e   :  { %v135_v4 = vadd.s32 1, %v131_v63  ;;  %vm228_vm13 = vcmp.lt.s32.totalorder %v495_v44, 3  ;;  %v235_v43 = vsel %vm229_vm12, %v222_v0, 920167782  ;;  %v238_v5 = vsel %vm226_vm11, %v512_v59, %v219_v61 }
  0x9f   :  { %vm134_vm10 = vc.u32 %v516_v30, %v498_v47  ;;  %v239_v18 = vsel %vm229_vm12, %v225_v37, 1326507024  ;;  %vm227_vm14 = vcmp.lt.s32.totalorder %v495_v44, 2  ;;  %v236_v9 = vsel %vm228_vm13, %v219_v61, %v235_v43 }
  0xa0   :  { %v136_v6 = vsel %vm134_vm10, %v135_v4, %v131_v63  ;;  %v240_v10 = vsel %vm228_vm13, %v222_v0, %v239_v18  ;;  %v237_v12 = vsel %vm227_vm14, %v234_v40, %v236_v9  ;;  %v243_v14 = vand.u32 65535, %v524_v2 }
  0xa1   :  { %v137_v11 = vadd.s32 %v136_v6, %v132_v3  ;;  %v241_v13 = vsel %vm227_vm14, %v238_v5, %v240_v10  ;;  %v244_v15 = vshrl.u32 %v524_v2, 16  ;;  %v268_v21 = vshrl.u32 %v237_v12, 16 }
  0xa2   :  { %v245_v16 = vand.u32 65535, %v241_v13  ;;  %v246_v19 = vshrl.u32 %v241_v13, 16  ;;  %v267_v23 = vand.u32 65535, %v237_v12  ;;  %v231_v34 = vsel %vm229_vm12, %v219_v61, 2102212464 }
  0xa3   :  { %v138_v22 = vadd.s32 536870912, %v137_v11  ;;  %v270_v31 = vmul.u32 %v268_v21, %v243_v14  ;;  %v272_v52 = vmul.u32 %v268_v21, %v244_v15  ;;  %v210_v0 = vshrl.u32 %v416_v28, %v492_v42 }
  0xa4   :  { %v248_v26 = vmul.u32 %v246_v19, %v243_v14  ;;  %v249_v27 = vmul.u32 %v245_v16, %v244_v15  ;;  %v247_v32 = vmul.u32 %v245_v16, %v243_v14  ;;  %v250_v36 = vmul.u32 %v246_v19, %v244_v15 }
  0xa5   :  { %v552_v29 = vshrl.u32 %v138_v22, 30  ;;  %v269_v38 = vmul.u32 %v267_v23, %v243_v14  ;;  %v273_v39 = vshll.u32 %v270_v31, 16  ;;  %v271_v25 = vmul.u32 %v267_v23, %v244_v15 }
  0xa6   :  { %v251_v33 = vshll.u32 %v248_v26, 16  ;;  %v253_v41 = vshll.u32 %v249_v27, 16  ;;  %v252_v48 = vshrl.u32 %v248_v26, 16  ;;  %v254_v37 = vshrl.u32 %v249_v27, 16 }
  0xa7   :  { %v140_v35 = vshll.u32 %v552_v29, 30  ;;  %vm277_vm1 = vc.u32 %v269_v38, %v273_v39  ;;  %v275_v54 = vshll.u32 %v271_v25, 16  ;;  %v279_v56 = vadd.s32 %v273_v39, %v269_v38 }
  0xa8   :  { %vm255_vm15 = vc.u32 %v247_v32, %v251_v33  ;;  %v257_v24 = vadd.s32 %v251_v33, %v247_v32  ;;  %v278_v55 = vsel %vm277_vm1, 1, %v415_v1  ;;  %v274_v40 = vshrl.u32 %v270_v31, 16 }
  0xa9   :  { %v141_v45 = vsub.s32 %v137_v11, %v140_v35  ;;  %v256_v46 = vsel %vm255_vm15, 1, %v415_v1  ;;  %v280_v60 = vadd.s32 %v278_v55, %v272_v52  ;;  %vm281_vm3 = vc.u32 %v279_v56, %v275_v54 }
  0xaa   :  { %v258_v49 = vadd.s32 %v256_v46, %v250_v36  ;;  %vm259_vm0 = vc.u32 %v257_v24, %v253_v41  ;;  %v282_v3 = vsel %vm281_vm3, 1, %v415_v1  ;;  %v230_v5 = vsel %vm226_vm11, %v210_v0, %v510_v58 }
  0xab   :  { %vm142_vm2 = vcmp.lt.s32.totalorder %v141_v45, 0  ;;  %v143_v50 = vsub.s32 0, %v141_v45  ;;  %v260_v51 = vsel %vm259_vm0, 1, %v415_v1  ;;  %v284_v43 = vadd.s32 %v282_v3, %v280_v60 }
  0xac   :  { %v262_v53 = vadd.s32 %v260_v51, %v258_v49  ;;  %v232_v18 = vsel %vm228_vm13, %v512_v59, %v231_v34  ;;  %v276_v6 = vshrl.u32 %v271_v25, 16  ;;  %v133_v28 = vadd.s32 %v498_v47, %v516_v30 }
  0xad   :  { %v144_v57 = vsel %vm142_vm2, %v143_v50, %v141_v45  ;;  %v285_v9 = vadd.s32 %v284_v43, %v274_v40  ;;  %v283_v1 = vadd.s32 %v279_v56, %v275_v54  ;;  %v233_v12 = vsel %vm227_vm14, %v230_v5, %v232_v18 }
  0xae   :  { %v145_v62 = vclz %v144_v57  ;;  %v263_v63 = vadd.s32 %v262_v53, %v252_v48  ;;  %v287_v16 = vmul.u32 %v524_v2, %v233_v12  ;;  %vm41_vm6 = vcmp.lt.s32.totalorder %v458_v7, 0 }
  0xaf   :  { %v286_v13 = vadd.s32 %v285_v9, %v276_v6  ;;  %vm580_vm7 = vcmp.le.f32.partialorder %v39_v8, 0.7853982  ;;  %v163_v38 = vsub.s32 4, %v552_v29  ;;  %vm349_vm13 = vcmask 261120  }
  0xb0   :  { %v371_v4 = vadd.s32 4294967294, %v145_v62  ;;  %v264_v61 = vadd.s32 %v263_v63, %v254_v37  ;;  %vm182_vm14 = vweird.f32 %v458_v7  ;;  %vm196_vm15 = vcmp.lt.s32.totalorder %v464_v17, 0 }
  0xb1   :  { %v290_v59 = vadd.s32 1, %v286_v13  ;;  %v164_v49 = vsel %vm41_vm6, %v163_v38, %v552_v29  ;;  %vm195_vm0 = vcmp.le.f32.partialorder %v194_v20, 0.7853982 }
  0xb2   :  { %vm372_vm4 = vcmp.lt.s32.totalorder %v371_v4, 0  ;;  %vm289_vm5 = vc.u32 %v264_v61, %v283_v1  ;;  %v166_v52 = vsel %vm580_vm7, 0, %v164_v49  ;;  %v288_v57 = vadd.s32 %v283_v1, %v264_v61 }
  0xb3   :  { %v148_v42 = vsel %vm372_vm4, 0, %v371_v4  ;;  %v291_v22 = vsel %vm289_vm5, %v290_v59, %v286_v13  ;;  %v183_v34 = vadd.s32 3, %v166_v52  ;;  %vm337_vm4 = vweird.f32 %v464_v17 }
  0xb4   :  { %v149_v10 = vsub.s32 32, %v148_v42  ;;  %v153_v11 = vsub.s32 4294967266, %v148_v42  ;;  %v150_v58 = vshll.u32 %v141_v45, %v148_v42  ;;  %v292_v23 = vadd.s32 %v291_v22, %v287_v16 }
  0xb5   :  { %v184_v18 = vand.u32 3, %v183_v34 }
  0xb6   :  { %v151_v14 = vshrl.u32 %v133_v28, %v149_v10  ;;  %v154_v15 = vadd.s32 127, %v153_v11  ;;  %v293_v30 = vadd.s32 536870912, %v292_v23 }
  0xb7   :  { %vm185_vm10 = vcmp.lt.s32.totalorder %v184_v18, 2  ;;  %vm186_vm11 = vcmp.eq.s32.totalorder %v184_v18, 0  ;;  %vm189_vm12 = vcmp.eq.s32.totalorder %v184_v18, 2 }
  0xb8   :  { %v152_v19 = vor.u32 %v151_v14, %v150_v58  ;;  %v155_v21 = vshll.u32 %v154_v15, 23  ;;  %v574_v31 = vshrl.u32 %v293_v30, 30 }
  0xba   :  { %v156_v47 = vor.u32 4788187, %v155_v21  ;;  %v159_v27 = vcvt.s32.f32 %v152_v19  ;;  %v295_v32 = vshll.u32 %v574_v31, 30  ;;  %v318_v16 = vsub.s32 4, %v574_v31 }
  0xbc   :  { %v157_v26 = vand.u32 2147483647, %v156_v47  ;;  %v296_v35 = vsub.s32 %v292_v23, %v295_v32 }
  0xbe   :  { %v160_v44 = vmul.f32 %v159_v27, %v157_v26  ;;  %vm297_vm8 = vcmp.lt.s32.totalorder %v296_v35, 0  ;;  %v298_v41 = vsub.s32 0, %v296_v35 }
  0xc0   :  { %v161_v33 = vxor.u32 2147483648, %v160_v44  ;;  %v299_v25 = vsel %vm297_vm8, %v298_v41, %v296_v35 }
  0xc1   :  { %v300_v46 = vclz %v299_v25 }
  0xc2   :  { %v162_v36 = vsel %vm41_vm6, %v161_v33, %v160_v44 }
  0xc3   :  { %v165_v39 = vsel %vm580_vm7, %v458_v7, %v162_v36  ;;  %v374_v50 = vadd.s32 4294967294, %v300_v46  ;;  %v319_v7 = vsel %vm196_vm15, %v318_v16, %v574_v31 }
  0xc4   :  { %v167_v24 = vmul.f32 %v165_v39, %v165_v39  ;;  %v321_v26 = vsel %vm195_vm0, 0, %v319_v7 }
  0xc5   :  { %vm375_vm9 = vcmp.lt.s32.totalorder %v374_v50, 0 }
  0xc6   :  { %v175_v45 = vmul.f32 -0.00019511016, %v167_v24  ;;  %v168_v48 = vmul.f32 -0.001358992, %v167_v24  ;;  %v303_v55 = vsel %vm375_vm9, 0, %v374_v50 }
  0xc7   :  { %v304_v60 = vsub.s32 32, %v303_v55  ;;  %v308_v62 = vsub.s32 4294967266, %v303_v55  ;;  %v305_v37 = vshll.u32 %v296_v35, %v303_v55  ;;  %v338_v35 = vadd.s32 3, %v321_v26 }
  0xc8   :  { %v176_v8 = vadd.f32 0.008332121, %v175_v45  ;;  %v169_v51 = vadd.f32 0.041655596, %v168_v48 }
  0xc9   :  { %v306_v3 = vshrl.u32 %v288_v57, %v304_v60  ;;  %v309_v29 = vadd.s32 127, %v308_v62 }
  0xca   :  { %v177_v53 = vmul.f32 %v176_v8, %v167_v24  ;;  %v170_v54 = vmul.f32 %v169_v51, %v167_v24 }
  0xcb   :  { %v307_v43 = vor.u32 %v306_v3, %v305_v37  ;;  %v310_v5 = vshll.u32 %v309_v29, 23 }
  0xcc   :  { %v178_v56 = vadd.f32 -0.16666654, %v177_v53  ;;  %v171_v63 = vadd.f32 -0.4999988, %v170_v54 }
  0xcd   :  { %v311_v28 = vor.u32 4788187, %v310_v5  ;;  %v314_v61 = vcvt.s32.f32 %v307_v43 }
  0xce   :  { %v179_v0 = vmul.f32 %v178_v56, %v167_v24  ;;  %v172_v4 = vmul.f32 %v171_v63, %v167_v24 }
  0xcf   :  { %v312_v11 = vand.u32 2147483647, %v311_v28 }
  0xd0   :  { %v180_v40 = vadd.f32 1.0, %v179_v0  ;;  %v173_v6 = vadd.f32 1.0, %v172_v4 }
  0xd1   :  { %v315_v1 = vmul.f32 %v314_v61, %v312_v11 }
  0xd2   :  { %v181_v9 = vmul.f32 %v180_v40, %v165_v39  ;;  %v190_v42 = vxor.u32 2147483648, %v173_v6  ;;  %v339_v39 = vand.u32 3, %v338_v35 }
  0xd3   :  { %v316_v14 = vxor.u32 2147483648, %v315_v1 }
  0xd4   :  { %v187_v10 = vxor.u32 2147483648, %v181_v9  ;;  %v191_v13 = vsel %vm189_vm12, %v190_v42, %v181_v9  ;;  %vm341_vm1 = vcmp.eq.s32.totalorder %v339_v39, 0  ;;  %vm344_vm2 = vcmp.eq.s32.totalorder %v339_v39, 2 }
  0xd5   :  { %v317_v59 = vsel %vm196_vm15, %v316_v14, %v315_v1  ;;  %vm340_vm3 = vcmp.lt.s32.totalorder %v339_v39, 2 }
  0xd6   :  { %v188_v12 = vsel %vm186_vm11, %v173_v6, %v187_v10  ;;  %v320_v19 = vsel %vm195_vm0, %v464_v17, %v317_v59 }
  0xd7   :  { %v192_v58 = vsel %vm185_vm10, %v188_v12, %v191_v13  ;;  %v322_v21 = vmul.f32 %v320_v19, %v320_v19 }
  0xd8   :  { %v193_v15 = vsel %vm182_vm14, nan, %v192_v58 }
  0xd9   :  { %350 = vst.msk [vmem:[#allocation2] sm:$0xff] %vm349_vm13, %v193_v15  ;;  %v330_v22 = vmul.f32 -0.00019511016, %v322_v21  ;;  %v323_v23 = vmul.f32 -0.001358992, %v322_v21 }
  0xdb   :  { %v331_v47 = vadd.f32 0.008332121, %v330_v22  ;;  %v324_v30 = vadd.f32 0.041655596, %v323_v23 }
  0xdd   :  { %v332_v27 = vmul.f32 %v331_v47, %v322_v21  ;;  %v325_v44 = vmul.f32 %v324_v30, %v322_v21 }
  0xdf   :  { %v333_v32 = vadd.f32 -0.16666654, %v332_v27  ;;  %v326_v33 = vadd.f32 -0.4999988, %v325_v44 }
  0xe1   :  { %v334_v2 = vmul.f32 %v333_v32, %v322_v21  ;;  %v327_v20 = vmul.f32 %v326_v33, %v322_v21 }
  0xe3   :  { %v335_v36 = vadd.f32 1.0, %v334_v2  ;;  %v328_v38 = vadd.f32 1.0, %v327_v20 }
  0xe5   :  { %v336_v41 = vmul.f32 %v335_v36, %v320_v19  ;;  %v345_v24 = vxor.u32 2147483648, %v328_v38 }
  0xe7   :  { %v342_v31 = vxor.u32 2147483648, %v336_v41  ;;  %v346_v45 = vsel %vm344_vm2, %v345_v24, %v336_v41 }
  0xe9   :  { %v343_v25 = vsel %vm341_vm1, %v328_v38, %v342_v31 }
  0xea   :  { %v347_v46 = vsel %vm340_vm3, %v343_v25, %v346_v45 }
  0xeb   :  { %v348_v48 = vsel %vm337_vm4, nan, %v347_v46 }
  0xec   :  { %351 = vst.msk [vmem:[#allocation2 + $0x8] sm:$0xff] %vm349_vm13, %v348_v48 }
  0xed   :  { %364 = dma.vmem_to_hbm [thread:$0]  %s357_s1, 256, %s359_s21, [#allocation3], %s423_s22, %s423_s22, %s424_s23  }
  0xee   :  { %413 = dma.done.wait [#allocation3], 256  }
  0xef   :  { %414 = vsyncadd [#allocation3], 4294967040 }
  0xf0   :  { %369 = vsyncpa [#allocation3], 1 }

</bundles_post_ra>
